<compile_context>
chip_gen: v7x
topology: tpu7x:2x2x1
jax: 0.10.0
libtpu: 0.0.40
codegen_flags: <defaults>
</compile_context>

<pallas_src>
import numpy as np
import jax
import jax.numpy as jnp
from jax import lax
from jax.experimental import pallas as pl
from jax.experimental.pallas import tpu as pltpu


def _make_hetero_kernel(dist_type: str, margin: float, gps: int, g: int, d: int,
                        label_num: int, use_reshape: bool):
    """Per-step kernel processing `gps` groups of `g` rows each (static)."""
    rows = gps * g
    inv_g = 1.0 / float(g)
    inv_g2 = inv_g * inv_g
    has_tail = (label_num % gps) != 0

    if dist_type not in ("cos", "l2", "l1"):
        raise ValueError(f"unsupported dist_type {dist_type}")

    def kernel(f1_ref, f2_ref, out_ref):
        if use_reshape:
            # Group sums via reshape + sublane reduce: linear in data, no MXU.
            x1 = f1_ref[...].astype(jnp.float32).reshape(gps, g, d)
            x2 = f2_ref[...].astype(jnp.float32).reshape(gps, g, d)
            s1 = jnp.sum(x1, axis=1)            # (gps, d)
            s2 = jnp.sum(x2, axis=1)
        else:
            # Fallback for G not a multiple of 8: block-of-ones selection
            # matmul, with gps capped (<=128) in the wrapper so the quadratic
            # cost stays negligible relative to the HBM traffic.
            p_idx = lax.broadcasted_iota(jnp.int32, (gps, rows), 0)
            r_idx = lax.broadcasted_iota(jnp.int32, (gps, rows), 1)
            mask = (r_idx >= p_idx * g) & (r_idx < (p_idx + 1) * g)
            sel = mask.astype(f1_ref.dtype)
            s1 = jnp.dot(sel, f1_ref[...], preferred_element_type=jnp.float32)
            s2 = jnp.dot(sel, f2_ref[...], preferred_element_type=jnp.float32)

        if dist_type == "cos":
            # cos on centers == cos on sums; fold 1/G^2 into the scalars so the
            # eps clamp matches the center-based reference exactly.
            dot = jnp.sum(s1 * s2, axis=1, keepdims=True) * inv_g2   # (gps, 1)
            n1s = jnp.sum(s1 * s1, axis=1, keepdims=True) * inv_g2
            n2s = jnp.sum(s2 * s2, axis=1, keepdims=True) * inv_g2
            cos = dot * lax.rsqrt(jnp.maximum(n1s * n2s, jnp.float32(1e-16)))
            contrib = jnp.maximum(jnp.float32(0.0), jnp.float32(1.0) - cos)
        elif dist_type == "l2":
            diff = s1 - s2
            sq = jnp.sum(diff * diff, axis=1, keepdims=True) * inv_g2
            contrib = jnp.abs(jnp.float32(margin) - sq)
        else:  # 'l1'
            diff = s1 - s2
            ad = jnp.sum(jnp.abs(diff), axis=1, keepdims=True) * (inv_g / float(d))
            contrib = jnp.abs(jnp.float32(margin) - ad)

        if has_tail:
            # Zero the contributions of groups past label_num (partial last
            # step reads an undefined pad region; mask makes it irrelevant).
            gidx = (pl.program_id(0) * gps
                    + lax.broadcasted_iota(jnp.int32, (gps, 1), 0))
            contrib = jnp.where(gidx < label_num, contrib, jnp.float32(0.0))

        # This step's partial sum goes to its own lane-dense output block
        # (no cross-step accumulator -> safe under "parallel").
        out_ref[...] = jnp.full((1, 8, 128), jnp.sum(contrib), dtype=jnp.float32)

    return kernel


def hetero_loss_pallas(feat1, feat2, label1, *, margin=10, dist_type="cos",
                       max_groups_per_step=None,
                       block_cap_bytes=4 * 1024 * 1024):
    """Pallas implementation of hetero_loss.forward.

    feat1, feat2: (N, D) arrays; label1: (N,) labels, grouped contiguously
    (matching torch.chunk semantics with equal group sizes).  Returns a scalar
    float32 loss.
    """
    # Number of distinct labels must be static -> computed host-side.
    label_num = int(np.unique(np.asarray(label1)).shape[0])
    N, D = feat1.shape
    assert feat2.shape == (N, D)
    assert N % label_num == 0, \
        "equal group sizes required (torch.chunk with N divisible by label_num)"
    G = N // label_num
    itemsize = jnp.dtype(feat1.dtype).itemsize
    sub_mult = {4: 8, 2: 16, 1: 32}.get(itemsize, 8)  # sublane tile of input dtype

    # Reshape path needs each (G, D) slab to start on a sublane-tile boundary
    # in the f32 working layout.
    use_reshape = (G % 8 == 0)

    # ---- choose groups-per-step (gps) ----
    group_bytes = max(G * D * itemsize, 1)
    cap = max(1, block_cap_bytes // group_bytes)        # DMA size cap (~4 MiB)
    if not use_reshape:
        cap = min(cap, 128)                             # bound O(gps^2) fallback
    if max_groups_per_step is not None:
        cap = min(cap, int(max_groups_per_step))
    cap = max(1, min(cap, label_num))
    if label_num >= 2:
        # Keep >= 2 grid steps: v7x has 2 TCs and the "parallel" axis is useless
        # with a single step; also gives the pipeline something to overlap.
        cap = min(cap, (label_num + 1) // 2)

    gps = None
    for cand in range(cap, 0, -1):
        if (cand * G) % sub_mult == 0:                  # (8,128) rule on the block
            gps = cand
            break
    if gps is None:
        # No aligned multi-step block exists; fall back to one full-array block
        # (full-extent blocks are exempt from the tiling rule).
        # TODO(synk): pad rows / add a D-reduction axis if this ever exceeds VMEM.
        gps = label_num

    num_steps = -(-label_num // gps)                    # ceil
    rows = gps * G

    kernel = _make_hetero_kernel(dist_type, float(margin), gps, G, D,
                                 label_num, use_reshape)

    try:
        vmem_cap = int(pltpu.get_tpu_info().vmem_capacity_bytes)
    except Exception:
        vmem_cap = 64 * 1024 * 1024                     # conservative (v7x per-TC)
    # With the 4 MiB block cap, residency is ~20-30 MiB worst case; this limit
    # leaves headroom on v7x's 64 MiB while not constraining v5e/v6e.
    vmem_limit = min(int(vmem_cap * 0.75), 96 * 1024 * 1024)

    out = pl.pallas_call(
        kernel,
        out_shape=jax.ShapeDtypeStruct((num_steps, 8, 128), jnp.float32),
        grid_spec=pltpu.PrefetchScalarGridSpec(
            num_scalar_prefetch=0,
            grid=(num_steps,),
            in_specs=[
                pl.BlockSpec((rows, D), lambda i: (i, 0)),
                pl.BlockSpec((rows, D), lambda i: (i, 0)),
            ],
            out_specs=pl.BlockSpec((1, 8, 128), lambda i: (i, 0, 0)),
        ),
        compiler_params=pltpu.CompilerParams(
            # Each step owns its own output block -> safe to shard across TCs.
            dimension_semantics=("parallel",),
            vmem_limit_bytes=vmem_limit,
        ),
    )(feat1, feat2)

    # Final (tiny) reduction over per-step partials done in plain JAX.
    return jnp.sum(out[:, 0, 0])


def hetero_loss_ref(feat1, feat2, label1, *, margin=10, dist_type="cos"):
    """Pure-JAX reference mirroring the PyTorch forward."""
    label_num = int(np.unique(np.asarray(label1)).shape[0])
    N, D = feat1.shape
    G = N // label_num
    dist = jnp.float32(0.0)
    for i in range(label_num):
        c1 = jnp.mean(feat1[i * G:(i + 1) * G].astype(jnp.float32), axis=0)
        c2 = jnp.mean(feat2[i * G:(i + 1) * G].astype(jnp.float32), axis=0)
        if dist_type == "cos":
            cos = jnp.sum(c1 * c2) / jnp.maximum(
                jnp.linalg.norm(c1) * jnp.linalg.norm(c2), 1e-8)
            dist = dist + jnp.maximum(0.0, 1.0 - cos)
        elif dist_type == "l2":
            dist = dist + jnp.abs(margin - jnp.sum((c1 - c2) ** 2))
        else:
            dist = dist + jnp.abs(margin - jnp.mean(jnp.abs(c1 - c2)))
    return dist


def _check(feat1, feat2, label1, dist_type, **kw):
    got = jax.block_until_ready(
        hetero_loss_pallas(feat1, feat2, label1, margin=10, dist_type=dist_type, **kw))
    ref = hetero_loss_ref(feat1, feat2, label1, margin=10, dist_type=dist_type)
    np.testing.assert_allclose(np.asarray(got), np.asarray(ref), rtol=1e-4, atol=1e-4)


if __name__ == "__main__":
    key = jax.random.PRNGKey(0)
    k1, k2, k3, k4, k5, k6 = jax.random.split(key, 6)

    # Case A: N=32, D=64, 4 labels (G=8) -> reshape path, 2 steps of 2 groups.
    N, D, label_num = 32, 64, 4
    f1 = jax.random.normal(k1, (N, D), dtype=jnp.float32)
    f2 = jax.random.normal(k2, (N, D), dtype=jnp.float32)
    lbl = jnp.asarray(np.repeat(np.arange(label_num), N // label_num), jnp.int32)
    for dt in ("cos", "l2", "l1"):
        _check(f1, f2, lbl, dt)

    # Case B: force 1 group per step (4 steps) on the same data.
    _check(f1, f2, lbl, "cos", max_groups_per_step=1)

    # Case C: G=4 (not a multiple of 8) -> capped MXU selection fallback path.
    Nc, lc = 32, 8
    f1c = jax.random.normal(k3, (Nc, D), dtype=jnp.float32)
    f2c = jax.random.normal(k4, (Nc, D), dtype=jnp.float32)
    lblc = jnp.asarray(np.repeat(np.arange(lc), Nc // lc), jnp.int32)
    for dt in ("cos", "l2", "l1"):
        _check(f1c, f2c, lblc, dt)

    # Case D: prime label_num (5 groups of 8) -> masked partial tail step.
    Nd, ld = 40, 5
    f1d = jax.random.normal(k5, (Nd, D), dtype=jnp.float32)
    f2d = jax.random.normal(k6, (Nd, D), dtype=jnp.float32)
    lbld = jnp.asarray(np.repeat(np.arange(ld), Nd // ld), jnp.int32)
    for dt in ("cos", "l2", "l1"):
        _check(f1d, f2d, lbld, dt)

    print("KERNEL_OK")
</pallas_src>

<mosaic_0001>
module attributes {stable_mosaic.version = 11 : i64} {
  func.func @kernel(%arg0: i32, %arg1: memref<16x64xf32, #tpu.memory_space<vmem>>, %arg2: memref<16x64xf32, #tpu.memory_space<vmem>>, %arg3: memref<1x8x128xf32, #tpu.memory_space<vmem>>) attributes {dimension_semantics = [#tpu.dimension_semantics<parallel>], iteration_bounds = array<i64: 2>, scalar_prefetch = 0 : i64, scratch_operands = 0 : i64, tpu.core_type = #tpu.core_type<tc>, window_params = [{transform_indices = @transform_0, window_bounds = array<i64: 16, 64>}, {transform_indices = @transform_1, window_bounds = array<i64: 16, 64>}, {transform_indices = @transform_2, window_bounds = array<i64: 1, 8, 128>}]} {
    %c0 = arith.constant 0 : index
    %c0_0 = arith.constant 0 : index
    %0 = vector.load %arg1[%c0, %c0_0] : memref<16x64xf32, #tpu.memory_space<vmem>>, vector<16x64xf32>
    %1 = vector.shape_cast %0 : vector<16x64xf32> to vector<2x8x64xf32>
    %c0_1 = arith.constant 0 : index
    %c0_2 = arith.constant 0 : index
    %2 = vector.load %arg2[%c0_1, %c0_2] : memref<16x64xf32, #tpu.memory_space<vmem>>, vector<16x64xf32>
    %3 = vector.shape_cast %2 : vector<16x64xf32> to vector<2x8x64xf32>
    %cst = arith.constant dense<0.000000e+00> : vector<2x64xf32>
    %4 = vector.multi_reduction <add>, %1, %cst [1] : vector<2x8x64xf32> to vector<2x64xf32>
    %cst_3 = arith.constant dense<0.000000e+00> : vector<2x64xf32>
    %5 = vector.multi_reduction <add>, %3, %cst_3 [1] : vector<2x8x64xf32> to vector<2x64xf32>
    %6 = arith.mulf %4, %5 : vector<2x64xf32>
    %cst_4 = arith.constant dense<0.000000e+00> : vector<2xf32>
    %7 = vector.multi_reduction <add>, %6, %cst_4 [1] : vector<2x64xf32> to vector<2xf32>
    %8 = vector.shape_cast %7 : vector<2xf32> to vector<2x1xf32>
    %cst_5 = arith.constant 1.562500e-02 : f32
    %9 = vector.broadcast %cst_5 : f32 to vector<2x1xf32>
    %10 = arith.mulf %8, %9 : vector<2x1xf32>
    %11 = arith.mulf %4, %4 : vector<2x64xf32>
    %cst_6 = arith.constant dense<0.000000e+00> : vector<2xf32>
    %12 = vector.multi_reduction <add>, %11, %cst_6 [1] : vector<2x64xf32> to vector<2xf32>
    %13 = vector.shape_cast %12 : vector<2xf32> to vector<2x1xf32>
    %cst_7 = arith.constant 1.562500e-02 : f32
    %14 = vector.broadcast %cst_7 : f32 to vector<2x1xf32>
    %15 = arith.mulf %13, %14 : vector<2x1xf32>
    %16 = arith.mulf %5, %5 : vector<2x64xf32>
    %cst_8 = arith.constant dense<0.000000e+00> : vector<2xf32>
    %17 = vector.multi_reduction <add>, %16, %cst_8 [1] : vector<2x64xf32> to vector<2xf32>
    %18 = vector.shape_cast %17 : vector<2xf32> to vector<2x1xf32>
    %cst_9 = arith.constant 1.562500e-02 : f32
    %19 = vector.broadcast %cst_9 : f32 to vector<2x1xf32>
    %20 = arith.mulf %18, %19 : vector<2x1xf32>
    %21 = arith.mulf %15, %20 : vector<2x1xf32>
    %cst_10 = arith.constant 1.000000e-16 : f32
    %22 = vector.broadcast %cst_10 : f32 to vector<2x1xf32>
    %23 = arith.maximumf %21, %22 : vector<2x1xf32>
    %24 = math.rsqrt %23 : vector<2x1xf32>
    %25 = arith.mulf %10, %24 : vector<2x1xf32>
    %cst_11 = arith.constant 1.000000e+00 : f32
    %26 = vector.broadcast %cst_11 : f32 to vector<2x1xf32>
    %27 = arith.subf %26, %25 : vector<2x1xf32>
    %cst_12 = arith.constant 0.000000e+00 : f32
    %28 = vector.broadcast %cst_12 : f32 to vector<2x1xf32>
    %29 = arith.maximumf %28, %27 : vector<2x1xf32>
    %30 = vector.shape_cast %29 : vector<2x1xf32> to vector<1x2x1xf32>
    %cst_13 = arith.constant dense<0.000000e+00> : vector<1xf32>
    %31 = vector.multi_reduction <add>, %30, %cst_13 [1, 2] : vector<1x2x1xf32> to vector<1xf32>
    %32 = vector.shape_cast %31 : vector<1xf32> to vector<1x1x1xf32>
    %33 = vector.extract %32[0, 0, 0] : f32 from vector<1x1x1xf32>
    %34 = vector.broadcast %33 : f32 to vector<1x8x128xf32>
    %c0_14 = arith.constant 0 : index
    %c0_15 = arith.constant 0 : index
    %c0_16 = arith.constant 0 : index
    %35 = vector.load %arg3[%c0_14, %c0_15, %c0_16] : memref<1x8x128xf32, #tpu.memory_space<vmem>>, vector<1x8x128xf32>
    tpu.vector_store %arg3[%c0_14, %c0_15, %c0_16], %34 {strides = array<i32>} : memref<1x8x128xf32, #tpu.memory_space<vmem>>, vector<1x8x128xf32>,
    return
  }
  func.func @transform_0(%arg0: i32) -> (i32, i32) {
    %c0_i32 = arith.constant 0 : i32
    %c0_i32_0 = arith.constant 0 : i32
    return %arg0, %c0_i32 : i32, i32
  }
  func.func @transform_1(%arg0: i32) -> (i32, i32) {
    %c0_i32 = arith.constant 0 : i32
    %c0_i32_0 = arith.constant 0 : i32
    return %arg0, %c0_i32 : i32, i32
  }
  func.func @transform_2(%arg0: i32) -> (i32, i32, i32) {
    %c0_i32 = arith.constant 0 : i32
    %c0_i32_0 = arith.constant 0 : i32
    %c0_i32_1 = arith.constant 0 : i32
    return %arg0, %c0_i32, %c0_i32_0 : i32, i32, i32
  }
}

</mosaic_0001>

<bundles_post_ra>
// kernel: tpu_custom_call.1
= control target key start
LH: loop header
LB: loop body
LE: loop exit
PB: predicated region body
PF: predicated region fallthrough
CT: control target
= control target key end

     0   :  { %7 = vsyncpa [#allocation3], 0  ;;  %s845_s0 = inlined_call_operand.hbm [shape: f32[32,64], index: 0, kind: input, shape index: {}]   ;;  %s846_s1 = inlined_call_operand.hbm [shape: f32[32,64], index: 1, kind: input, shape index: {}]   ;;  %s847_s2 = inlined_call_operand.hbm [shape: f32[2,8,128], index: 2, kind: output, shape index: {}]  }
   0x1   :  { %9 = vsyncpa [#allocation3 + $0x1], 0 }
   0x2   :  { %10 = vsyncpa [#allocation6], 0 }
   0x3   :  { %12 = vsyncpa [#allocation6 + $0x1], 0 }
   0x4   :  { %13 = vsyncpa [#allocation4], 0 }
   0x5   :  { %15 = vsyncpa [#allocation4 + $0x1], 0  ;;  %s623_s9 = smov 0   ;;  %s625_s10 = smov 0  }
   0x6   :  { %s627_s11 = smov 0   ;;  %s629_s12 = smov 0  }
   0x7 LB: > { %s644_s13 = sadd.s32 4294967295, %s601_s12   ;;  %s395_s14 = sadd.s32 4294967294, %s601_s12   ;;  %s601_s12 = sphi %s629_s12, %s863_s12   ;;  %s597_s11 = sphi %s627_s11, %s862_s11   ;;  %s593_s10 = sphi %s625_s10, %s861_s10   ;;  %s589_s9 = sphi %s623_s9, %s860_s9  }
   0x8   : > { %s648_s15 = sadd.s32 1, %s601_s12   ;;  %s28_s16 = sadd.s32 1, %s597_s11 }
   0x9   : > { %s25_s17 = ssub.s32 %s601_s12, %s648_s15  ;;  %p35_p0 = scmp.ne.s32.totalorder %s597_s11, %s593_s10 }
   0xa   : > { %p26_p1 = scmp.eq.s32.totalorder %s25_s17, 0  ;;  %p36_p2 = scmp.eq.s32.totalorder %s601_s12, 0 }
   0xb   : > { %p41_p3 = scmp.ne.s32.totalorder %s593_s10, %s589_s9  ;;  %p42_p4 = scmp.eq.s32.totalorder %s644_s13, 0 }
   0xc   : > { %s660_s18 = scalar_select %p26_p1, %s597_s11, %s28_s16  }
   0xd   : > { %p662_p5 = por %p36_p2, %p35_p0  ;;  %p666_p6 = por %p42_p4, %p41_p3 }
   0xe   : > { %p91_p7 = scmp.eq.s32.totalorder %s644_s13, 1  ;;  %p97_p8 = scmp.eq.s32.totalorder %s395_s14, 1 }
   0xf   : > { %s851_s20 = scalar_select %p666_p6, 1, 0 }
  0x10   : > { %p433_p10 = scmp.lt.s32.totalorder %s601_s12, 2  ;;  %p673_p11 = por %p91_p7, %p35_p0 }
  0x11   : > { %p677_p12 = por %p97_p8, %p41_p3  ;;  %s682_s23 = sand.u32 1, %s597_s11  }
  0x12   : > { %s852_s21 = scalar_select %p673_p11, 1, 0 }
  0x13   : > { %s853_s22 = scalar_select %p677_p12, 1, 0 }
  0x14   : > { %s412_s24 = sshll.u32 %s601_s12, 8  ;;  %s398_s25 = sshll.u32 %s682_s23, 4 }
  0x15   : > { %s691_s28 = scalar_lea.hbm %s845_s0, %s412_s24  ;;  %s121_s29 = scalar_lea.vmem [#allocation2], %s398_s25 }
  0x16   : > { %s128_s30 = sshll.u32 %s121_s29, 4  ;;  %p697_p13 = pnand %p433_p10, %p662_p5  ;;  %s701_s30 = int_to_ptr.vmem [resolvable:$true] %s128_s30 }
  0x17   : > { %s118_s4 = scalar_lea.sflag [#allocation3], %s682_s23  ;;  %s471_s5 = scalar_lea.hbm %s691_s28, 256 }
  0x18   : > { %p472_p0 = scmp.ne.s32.totalorder %s691_s28, %s471_s5  ;;  %p473_p1 = pneg %p697_p13 }
  0x19   : > { %s476_s8 = scalar_lea.hbm %s845_s0, 512  ;;  %p477_p4 = scmp.lt.u32.totalorder %s691_s28, %s845_s0 }
  0x1a   : > { %p474_p2 = pnand %p473_p1, %p472_p0  ;;  %p478_p5 = scmp.lt.u32.totalorder %s476_s8, %s471_s5 }
  0x1b   : > { %p480_p8 = scmp.lt.u32.totalorder %s471_s5, %s691_s28 }
  0x1c   : > { %p475_p3 = pneg %p474_p2  ;;  %p479_p7 = por %p478_p5, %p477_p4 }
  0x1e   : > { %p481_p10 = por %p480_p8, %p479_p7 }
  0x20   : > { %p482_p9 = pnand %p481_p10, %p475_p3 }
  0x22   : > { %485 = shalt.err (!%p482_p9)
}
  0x23   : > { %s486_s17 = scalar_lea.vmem %s701_s30, 256  ;;  %s603_s19 = smov [#allocation2]  }
  0x24   : > { %p487_p0 = scmp.ne.s32.totalorder %s701_s30, %s486_s17  ;;  %s491_s26 = sshll.u32 %s603_s19, 4  ;;  %s492_s26 = int_to_ptr.vmem [resolvable:$false] %s491_s26 }
  0x25   : > { %s493_s27 = scalar_lea.vmem %s492_s26, 512  ;;  %p494_p11 = scmp.lt.s32.totalorder %s701_s30, %s492_s26 }
  0x26   : > { %p489_p2 = pnand %p487_p0, %p473_p1  ;;  %p495_p4 = scmp.lt.s32.totalorder %s493_s27, %s486_s17 }
  0x28   : > { %p490_p12 = pneg %p489_p2  ;;  %p496_p5 = por %p495_p4, %p494_p11 }
  0x2a   : > { %p497_p7 = pnand %p496_p5, %p490_p12 }
  0x2c   : > { %500 = shalt.err (!%p497_p7)
}
  0x2d   : > { %s604_s29 = smov 128   ;;  %s605_s5 = smov 8  }
  0x2e   : > { %425 = dma.hbm_to_vmem [thread:$0]  (!%p697_p13), %s691_s28, 256, %s701_s30, %s118_s4, %s604_s29, %s604_s29, %s605_s5  }
  0x2f   : > { %p404_p9 = scmp.ge.s32.totalorder %s601_s12, 1  ;;  %p157_p11 = scmp.lt.s32.totalorder %s601_s12, 3 }
  0x30   : > { %s745_s14 = scalar_lea.hbm %s846_s1, %s412_s24  ;;  %s142_s16 = scalar_lea.vmem [#allocation5], %s398_s25 }
  0x31   : > { %p736_p12 = pnand %p404_p9, %p157_p11  ;;  %s149_s17 = sshll.u32 %s142_s16, 4  ;;  %s749_s17 = int_to_ptr.vmem [resolvable:$true] %s149_s17 }
  0x32   : > { %s139_s28 = scalar_lea.sflag [#allocation6], %s682_s23  ;;  %s501_s30 = scalar_lea.hbm %s745_s14, 256 }
  0x33   : > { %p502_p3 = scmp.ne.s32.totalorder %s745_s14, %s501_s30  ;;  %s506_s24 = scalar_lea.hbm %s846_s1, 512 }
  0x34   : > { %p507_p0 = scmp.lt.u32.totalorder %s745_s14, %s846_s1  ;;  %p508_p2 = scmp.lt.u32.totalorder %s506_s24, %s501_s30 }
  0x35   : > { %p504_p8 = pnand %p502_p3, %p473_p1  ;;  %p510_p5 = scmp.lt.u32.totalorder %s501_s30, %s745_s14 }
  0x36   : > { %p509_p4 = por %p508_p2, %p507_p0 }
  0x37   : > { %p505_p10 = pneg %p504_p8 }
  0x38   : > { %p511_p7 = por %p510_p5, %p509_p4 }
  0x3a   : > { %p512_p9 = pnand %p511_p7, %p505_p10 }
  0x3c   : > { %515 = shalt.err (!%p512_p9)
}
  0x3d   : > { %s516_s25 = scalar_lea.vmem %s749_s17, 256  ;;  %s606_s7 = smov [#allocation5]  }
  0x3e   : > { %p517_p11 = scmp.ne.s32.totalorder %s749_s17, %s516_s25  ;;  %s521_s8 = sshll.u32 %s606_s7, 4  ;;  %s522_s8 = int_to_ptr.vmem [resolvable:$false] %s521_s8 }
  0x3f   : > { %s523_s16 = scalar_lea.vmem %s522_s8, 512  ;;  %p524_p6 = scmp.lt.s32.totalorder %s749_s17, %s522_s8 }
  0x40   : > { %p519_p3 = pnand %p517_p11, %p473_p1  ;;  %p525_p0 = scmp.lt.s32.totalorder %s523_s16, %s516_s25 }
  0x42   : > { %p520_p8 = pneg %p519_p3  ;;  %p526_p2 = por %p525_p0, %p524_p6 }
  0x44   : > { %p527_p4 = pnand %p526_p2, %p520_p8 }
  0x46   : > { %530 = shalt.err (!%p527_p4)
}
  0x47   : > { %428 = dma.hbm_to_vmem [thread:$0]  (!%p697_p13), %s745_s14, 256, %s749_s17, %s139_s28, %s604_s29, %s604_s29, %s605_s5  }
  0x48   : > { %161 = sbr.rel (%p736_p12) target bundleno = 489 (0x1e9), region = 28  ;;  %s783_s30 = sand.u32 (!%p736_p12), 1, %s593_s10  }
  0x49   : > { %s405_s4 = sshll.u32 (!%p736_p12), %s783_s30, 4  ;;  %s164_s19 = scalar_lea.sflag (!%p736_p12), [#allocation3], %s783_s30 }
  0x4a   : > { %s167_s3 = scalar_lea.vmem (!%p736_p12), [#allocation2], %s405_s4  ;;  %p856_p6 = scmp.ne.s32.totalorder (!%p736_p12), %s851_s20, 0 }
  0x4f   : > { %576 = dma.done.wait (%p856_p6), %s164_s19, 256  }
  0x50   : > { %578 = vsyncadd (%p856_p6), %s164_s19, 4294967040  ;;  %s173_s23 = scalar_lea.sflag [#allocation6], %s783_s30  ;;  %s176_s29 = scalar_lea.vmem [#allocation5], %s405_s4 }
  0x51   : > { %580 = dma.done.wait (%p856_p6), %s173_s23, 256  }
  0x52   : > { %582 = vsyncadd (%p856_p6), %s173_s23, 4294967040  ;;  %vm208_vm0 = vcmask 523264   ;;  %v204_v0 = vld [vmem:[%s167_s3] sm:$0xff]  ;;  %v205_v1 = vld [vmem:[%s167_s3 + $0x8] sm:$0xff]  ;;  %vm241_vm1 = vcmask 1041409   ;;  %vm244_vm2 = vcmask 517120  }
  0x53   : > { %v206_v2 = vld [vmem:[%s176_s29] sm:$0xff]  ;;  %v209_v3 = vsel %vm208_vm0, %v204_v0, 0.0  ;;  %v216_v4 = vsel %vm208_vm0, %v205_v1, 0.0  ;;  %v207_v5 = vld [vmem:[%s176_s29 + $0x8] sm:$0xff]  ;;  %vm275_vm3 = vcmask 1024   ;;  %s407_s20 = sshll.u32 %s783_s30, 3 }
  0x54   : > { %v223_v6 = vsel %vm208_vm0, %v206_v2, 0.0  ;;  %v210_v7 = vrot.slane %v209_v3, 4  ;;  %v217_v8 = vrot.slane %v216_v4, 4  ;;  %v230_v10 = vsel %vm208_vm0, %v207_v5, 0.0  ;;  %s201_s5 = scalar_lea.vmem [#allocation7], %s407_s20  ;;  %s409_s14 = sshll.u32 %s644_s13, 7 }
  0x55   : > { %v224_v9 = vrot.slane %v223_v6, 4  ;;  %v231_v11 = vrot.slane %v230_v10, 4  ;;  %s302_s6 = sshll.u32 %s201_s5, 4  ;;  %s803_s26 = scalar_lea.hbm %s847_s2, %s409_s14  ;;  %s798_s6 = int_to_ptr.vmem [resolvable:$true] %s302_s6 }
  0x56   : > { %v211_v12 = vadd.f32 %v210_v7, %v209_v3  ;;  %v218_v13 = vadd.f32 %v217_v8, %v216_v4  ;;  %s289_s27 = scalar_lea.sflag [#allocation4], %s783_s30  ;;  %s531_s25 = scalar_lea.vmem %s798_s6, 128 }
  0x57   : > { %v225_v14 = vadd.f32 %v224_v9, %v223_v6  ;;  %v232_v15 = vadd.f32 %v231_v11, %v230_v10  ;;  %p532_p13 = scmp.ne.s32.totalorder %s798_s6, %s531_s25  ;;  %p857_p1 = scmp.ne.s32.totalorder %s852_s21, 0 }
  0x58   : > { %v212_v16 = vrot.slane %v211_v12, 2  ;;  %v219_v17 = vrot.slane %v218_v13, 2  ;;  %s607_s13 = smov [#allocation7]  }
  0x59   : > { %v226_v18 = vrot.slane %v225_v14, 2  ;;  %v233_v19 = vrot.slane %v232_v15, 2  ;;  %p533_p12 = pnand %p532_p13, %p857_p1  ;;  %s535_s7 = sshll.u32 %s607_s13, 4  ;;  %s536_s7 = int_to_ptr.vmem [resolvable:$false] %s535_s7 }
  0x5a   : > { %v213_v20 = vadd.f32 %v212_v16, %v211_v12  ;;  %v220_v21 = vadd.f32 %v219_v17, %v218_v13  ;;  %s537_s8 = scalar_lea.vmem %s536_s7, 256  ;;  %p538_p5 = scmp.lt.s32.totalorder %s798_s6, %s536_s7 }
  0x5b   : > { %v227_v22 = vadd.f32 %v226_v18, %v225_v14  ;;  %v234_v23 = vadd.f32 %v233_v19, %v232_v15  ;;  %p534_p10 = pneg %p533_p12  ;;  %p539_p7 = scmp.lt.s32.totalorder %s537_s8, %s531_s25 }
  0x5c   : > { %v214_v24 = vrot.slane %v213_v20, 1  ;;  %v221_v25 = vrot.slane %v220_v21, 1 }
  0x5d   : > { %v228_v26 = vrot.slane %v227_v22, 1  ;;  %v235_v27 = vrot.slane %v234_v23, 1  ;;  %p540_p9 = por %p539_p7, %p538_p5 }
  0x5e   : > { %v215_v28 = vadd.f32 %v214_v24, %v213_v20  ;;  %v222_v29 = vadd.f32 %v221_v25, %v220_v21 }
  0x5f   : > { %v229_v30 = vadd.f32 %v228_v26, %v227_v22  ;;  %v236_v31 = vadd.f32 %v235_v27, %v234_v23  ;;  %p541_p11 = pnand %p540_p9, %p534_p10 }
  0x60   : > { %v249_v32 = vmul.f32 %v215_v28, %v215_v28  ;;  %v250_v33 = vmul.f32 %v222_v29, %v222_v29 }
  0x61   : > { %v259_v34 = vmul.f32 %v229_v30, %v229_v30  ;;  %v237_v35 = vmul.f32 %v229_v30, %v215_v28  ;;  %v260_v36 = vmul.f32 %v236_v31, %v236_v31  ;;  %v238_v37 = vmul.f32 %v236_v31, %v222_v29 }
  0x62   : > { %v253_v38 = vsel %vm241_vm1, %v250_v33, %v249_v32 }
  0x63   : > { %v255_v39 = vsel %vm244_vm2, %v253_v38, 0.0  ;;  %v263_v40 = vsel %vm241_vm1, %v260_v36, %v259_v34  ;;  %v242_v41 = vsel %vm241_vm1, %v238_v37, %v237_v35 }
  0x64   : > { %256 = vadd.xlane.f32.xlu0 %v255_v39  ;;  %v245_v42 = vsel %vm244_vm2, %v242_v41, 0.0  ;;  %v265_v43 = vsel %vm244_vm2, %v263_v40, 0.0 }
  0x65   : > { %246 = vadd.xlane.f32.xlu1 %v245_v42 }
  0x68   : > { %266 = vadd.xlane.f32.xlu0 %v265_v43 }
  0xf1   : > { %v257_v44 = vpop.xlane.xlu0 %256 }
  0xf2   : > { %v258_v46 = vmul.f32 0.015625, %v257_v44  ;;  %v247_v50 = vpop.xlane.xlu1 %246 }
  0xf3   : > { %v248_v51 = vmul.f32 0.015625, %v247_v50 }
  0xf5   : > { %v267_v45 = vpop.xlane.xlu0 %266 }
  0xf6   : > { %v268_v47 = vmul.f32 0.015625, %v267_v45 }
  0xf8   : > { %v269_v48 = vmul.f32 %v268_v47, %v258_v46 }
  0xfa   : > { %v270_v49 = vmax.f32 %v269_v48, 1e-16 }
  0xfc   : > { %469 = vrsqrt.f32 %v270_v49 }
 0x106   : > { %v470_v52 = vpop.eup %469 }
 0x107   : > { %v272_v53 = vmul.f32 %v470_v52, %v248_v51 }
 0x109   : > { %v273_v54 = vsub.f32 1.0, %v272_v53 }
 0x10b   : > { %v274_v55 = vmax.f32 %v273_v54, 0.0 }
 0x10d   : > { %v276_v56 = vsel %vm275_vm3, %v274_v55, 0.0 }
 0x10e   : > { %277 = vadd.xlane.f32.xlu1 %v276_v56 }
 0x19b   : > { %v278_v57 = vpop.xlane.xlu1 %277 }
 0x19c   : > { %v279_v58 = vrot.slane %v278_v57, 4 }
 0x19e   : > { %v280_v59 = vadd.f32 %v279_v58, %v278_v57 }
 0x1a0   : > { %v281_v60 = vrot.slane %v280_v59, 2 }
 0x1a2   : > { %v282_v61 = vadd.f32 %v281_v60, %v280_v59 }
 0x1a4   : > { %v283_v62 = vrot.slane %v282_v61, 1 }
 0x1a6   : > { %v284_v63 = vadd.f32 %v283_v62, %v282_v61 }
 0x1a8   : > { %414 = vpush %v284_v63 }
 0x1d9   : > { %s415_s17 = spop %414 }
 0x1da   : > { %v286_v0 = vstv %s415_s17 }
 0x1db   : > { %287 = vst [vmem:[%s201_s5] sm:$0xff] %v286_v0 }
 0x1dc   : > { %544 = shalt.err (!%p541_p11)
}
 0x1dd   : > { %s545_s16 = scalar_lea.hbm %s803_s26, 128  ;;  %s549_s19 = scalar_lea.hbm %s847_s2, 256 }
 0x1de   : > { %p546_p3 = scmp.ne.s32.totalorder %s803_s26, %s545_s16  ;;  %p550_p2 = scmp.lt.u32.totalorder %s803_s26, %s847_s2 }
 0x1df   : > { %p551_p4 = scmp.lt.u32.totalorder %s549_s19, %s545_s16  ;;  %p553_p13 = scmp.lt.u32.totalorder %s545_s16, %s803_s26 }
 0x1e0   : > { %p547_p8 = pnand %p546_p3, %p857_p1 }
 0x1e1   : > { %p552_p6 = por %p551_p4, %p550_p2 }
 0x1e2   : > { %p548_p0 = pneg %p547_p8 }
 0x1e3   : > { %p554_p12 = por %p553_p13, %p552_p6 }
 0x1e5   : > { %p555_p10 = pnand %p554_p12, %p548_p0 }
 0x1e7   : > { %558 = shalt.err (!%p555_p10)
}
 0x1e8   : > { %420 = dma.vmem_to_hbm [thread:$0]  (%p857_p1), %s798_s6, 128, %s803_s26, %s289_s27  }
 0x1e9 PF: > { %s314_s29 = sand.u32 1, %s589_s9   ;;  %p858_p5 = scmp.ne.s32.totalorder %s853_s22, 0 }
 0x1ea   : > { %p859_p7 = scmp.ge.s32.totalorder %s601_s12, 2  ;;  %s315_s20 = scalar_lea.sflag [#allocation4], %s314_s29 }
 0x1ec   : > { %p430_p9 = pnand %p859_p7, %p858_p5 }
 0x1ee   : > { %584 = dma.done.wait (!%p430_p9), %s315_s20, 128  }
 0x1ef   : > { %586 = vsyncadd (!%p430_p9), %s315_s20, 4294967168  ;;  %p18_p11 = scmp.ge.s32.totalorder %s648_s15, 4   ;;  %s860_s9 = smov %s593_s10 }
 0x1f0   : > { %s861_s10 = smov %s597_s11  ;;  %s862_s11 = smov %s660_s18 }
 0x1f1   : > { %s863_s12 = smov %s648_s15  ;;  %20 = sbr.rel (!%p18_p11) target bundleno = 7 (0x7), region = 86 }
 0x1f8   :  { %320 = vsyncpa [#allocation3], 1 }
 0x1f9   :  { %322 = vsyncpa [#allocation3 + $0x1], 1 }
 0x1fa   :  { %323 = vsyncpa [#allocation6], 1 }
 0x1fb   :  { %325 = vsyncpa [#allocation6 + $0x1], 1 }
 0x1fc   :  { %326 = vsyncpa [#allocation4], 1 }
 0x1fd   :  { %328 = vsyncpa [#allocation4 + $0x1], 1 }

</bundles_post_ra>
